<compile_context>
chip_gen: v5e
topology: v5e:2x2
jax: 0.10.0
libtpu: 0.0.40
codegen_flags: <defaults>
</compile_context>

<pallas_src>
import jax
import jax.numpy as jnp
from jax.experimental import pallas as pl
from jax.experimental.pallas import tpu as pltpu


# --------------------------------------------------------------------------
# Small helpers
# --------------------------------------------------------------------------
def _round_up(x, m):
    return (x + m - 1) // m * m


def _pick_vmem_limit():
    """Scoped-VMEM limit derived from the actual chip (v7x has only 64 MiB physical)."""
    cap = 64 * 1024 * 1024                       # conservative default (v7x physical)
    try:
        info = pltpu.get_tpu_info()
        for attr in ("vmem_capacity_bytes", "vmem_size_bytes", "vmem_bytes"):
            v = getattr(info, attr, None)
            if v:
                cap = int(v)
                break
    except Exception:
        pass
    # ~75% of physical, leave headroom for double-buffering / compiler scratch.
    return max(32 * 1024 * 1024, min(cap * 3 // 4, 100 * 1024 * 1024))


def _pick_row_tile(n_pad, vmem_limit):
    """Largest MXU-friendly row stripe TM whose double-buffered bf16 (TM, N_pad)
    S stripe stays well inside the VMEM budget."""
    for tm in (512, 256, 128):
        if n_pad % tm == 0 and 2 * tm * n_pad * 2 <= vmem_limit // 3:
            return tm
    # TODO(synk): for very large graphs also tile the contraction (column) axis of S.
    return 128


# --------------------------------------------------------------------------
# Per-layer kernel: one Sobolev branch per grid step, accumulated over k
# --------------------------------------------------------------------------
def _make_layer_kernel(propagate_first, apply_log_softmax):
    def kernel(x_ref, s_ref, w_ref, b_ref, c_ref, o_ref):
        k = pl.program_id(1)                      # branch index (reduction axis)
        s = s_ref[...]                            # (TM, N_pad) bf16 streamed row stripe
        w = w_ref[...]                            # (fin, fout) bf16, lane-0 aligned

        if propagate_first:                       # fin <= fout: (S_k @ x) @ W_k
            sx = jnp.dot(s, x_ref[...].astype(jnp.bfloat16),
                         preferred_element_type=jnp.float32)
            h = jnp.dot(sx.astype(jnp.bfloat16), w,
                        preferred_element_type=jnp.float32)
        else:                                     # fin > fout: S_k @ (x @ W_k)
            xw = jnp.dot(x_ref[...].astype(jnp.bfloat16), w,
                         preferred_element_type=jnp.float32)
            h = jnp.dot(s, xw.astype(jnp.bfloat16),
                        preferred_element_type=jnp.float32)

        h = h + b_ref[...]                        # bias AFTER propagation (GCNConv)
        contrib = c_ref[k] * jnp.maximum(h, 0.0)  # ReLU + linear-combination weight (f32)

        @pl.when(k == 0)                          # init accumulator with branch 0
        def _():
            o_ref[...] = contrib

        @pl.when(k > 0)
        def _():
            o_ref[...] = o_ref[...] + contrib

        if apply_log_softmax:                     # fused epilogue for the last layer
            @pl.when(k == pl.num_programs(1) - 1)
            def _():
                logits = o_ref[...]
                m = jnp.max(logits, axis=-1, keepdims=True)
                lse = jnp.log(jnp.sum(jnp.exp(logits - m), axis=-1, keepdims=True)) + m
                o_ref[...] = logits - lse

    return kernel


# --------------------------------------------------------------------------
# Wrapper: one pallas_call per CascadeLayer, S streamed as row stripes
# --------------------------------------------------------------------------
def ssobgnn_forward(x, sobolev, layer_params, *, alpha):
    """Eval-mode SSobGNN forward.

    x:            (N, in_channels) f32 node features (data.x)
    sobolev:      (alpha, N, N) f32 dense Sobolev propagation matrices
    layer_params: list of (W (alpha, fin, fout) f32, b (alpha, 1, fout) f32, c (alpha,) f32)
    """
    n = x.shape[0]
    num_layers = len(layer_params)
    vmem_limit = _pick_vmem_limit()

    n_pad = _round_up(n, 128)
    tm = _pick_row_tile(n_pad, vmem_limit)
    nt = n_pad // tm

    # Pad to TPU-friendly shapes.  Zero-padded rows/cols of S never contaminate real
    # rows, and padded output rows are sliced off at the end.  The streamed operand
    # (S) is bf16; f32 accumulation happens on the MXU inside the kernel.
    s_pad = jnp.zeros((alpha, n_pad, n_pad), jnp.bfloat16)
    s_pad = s_pad.at[:, :n, :n].set(sobolev.astype(jnp.bfloat16))
    h = jnp.zeros((n_pad, x.shape[1]), jnp.float32).at[:n, :].set(x)

    # TODO(synk): for realistic sparse graphs, drive the S index_map with
    # scalar-prefetched block-CSR indices (PrefetchScalarGridSpec) to skip zero tiles.
    for li, (w, b, c) in enumerate(layer_params):
        _, fin, fout = w.shape
        propagate_first = fin <= fout             # static per-layer matmul-order choice
        last = li == num_layers - 1

        if propagate_first:
            flops = alpha * (2 * n_pad * n_pad * fin + 2 * n_pad * fin * fout)
        else:
            flops = alpha * (nt * 2 * n_pad * fin * fout + 2 * n_pad * n_pad * fout)
        bytes_acc = (alpha * n_pad * n_pad * 2    # bf16 S stream (dominant traffic)
                     + n_pad * (fin + fout) * 4
                     + w.size * 2 + b.size * 4 + c.size * 4)
        trans = 2 * n_pad * fout if last else 0

        h = pl.pallas_call(
            _make_layer_kernel(propagate_first, last),
            out_shape=jax.ShapeDtypeStruct((n_pad, fout), jnp.float32),
            grid=(nt, alpha),                     # (row tiles, Sobolev branches)
            in_specs=[
                pl.BlockSpec((n_pad, fin), lambda t, k: (0, 0)),           # x: resident
                pl.BlockSpec((None, tm, n_pad), lambda t, k: (k, t, 0)),   # S: streamed stripes
                pl.BlockSpec((None, fin, fout), lambda t, k: (k, 0, 0)),   # W_k: per-branch
                pl.BlockSpec((None, 1, fout), lambda t, k: (k, 0, 0)),     # b_k
                pl.BlockSpec(memory_space=pltpu.MemorySpace.SMEM),         # c: scalars
            ],
            out_specs=pl.BlockSpec((tm, fout), lambda t, k: (t, 0)),       # acc over k
            cost_estimate=pl.CostEstimate(flops=flops, transcendentals=trans,
                                          bytes_accessed=bytes_acc),
            compiler_params=pltpu.CompilerParams(
                dimension_semantics=("parallel", "arbitrary"),
                vmem_limit_bytes=vmem_limit),
        )(h, s_pad, w.astype(jnp.bfloat16), b, c)
        # F.dropout(training=False) between layers is the identity -> nothing to do.
        # TODO(synk): output last dim (4/16) is not lane-dense; pad classes to 128
        # (mask to -inf before log_softmax) only if the store epilogue shows up in profiles.

    return h[:n]


# --------------------------------------------------------------------------
# Pure-JAX f32 reference (for correctness cross-check)
# --------------------------------------------------------------------------
def ssobgnn_reference(x, sobolev, layer_params, *, alpha):
    h = x
    for (w, b, c) in layer_params:
        acc = None
        for k in range(alpha):
            hk = jnp.maximum(sobolev[k] @ (h @ w[k]) + b[k], 0.0)
            acc = c[k] * hk if acc is None else acc + c[k] * hk
        h = acc
    m = jnp.max(h, axis=-1, keepdims=True)
    return h - (jnp.log(jnp.sum(jnp.exp(h - m), axis=-1, keepdims=True)) + m)


# --------------------------------------------------------------------------
# Host-side data prep: Sobolev matrices + deterministic parameter init
# --------------------------------------------------------------------------
def build_sobolev_matrices(edge_index, num_nodes, alpha, epsilon=1.0):
    """Dense stand-ins for data.edge_index_k / edge_attr_k of the PyTorch model:
    Hadamard powers of (A + eps*I) with GCN-style symmetric normalization."""
    src, dst = edge_index[0], edge_index[1]
    adj = jnp.zeros((num_nodes, num_nodes), jnp.float32).at[dst, src].set(1.0)
    base = adj + epsilon * jnp.eye(num_nodes, dtype=jnp.float32)
    mats = []
    for k in range(1, alpha + 1):
        m = base ** k                             # Hadamard power keeps the sparsity pattern
        deg = jnp.sum(m, axis=-1)
        dinv = jnp.where(deg > 0, 1.0 / jnp.sqrt(deg), 0.0)
        mats.append(dinv[:, None] * m * dinv[None, :])
    return jnp.stack(mats, axis=0)                # (alpha, N, N)


def init_ssobgnn_params(key, in_channels, hidden, out_channels, number_layers, alpha):
    dims = [in_channels] + [hidden] * (number_layers - 1) + [out_channels]
    params = []
    for li in range(number_layers):
        fin, fout = dims[li], dims[li + 1]
        key, kw = jax.random.split(key)
        limit = (6.0 / (fin + fout)) ** 0.5       # glorot-uniform (per-branch GCNConv W)
        w = jax.random.uniform(kw, (alpha, fin, fout), jnp.float32, -limit, limit)
        b = jnp.zeros((alpha, 1, fout), jnp.float32)
        c = jnp.full((alpha,), 1.0 / alpha, jnp.float32)   # LinearCombinationLayer weights
        params.append((w, b, c))
    return params


if __name__ == "__main__":
    # Model hyper-parameters (args / kwargs of the PyTorch module)
    IN_CHANNELS = 8
    HIDDEN_UNITS = 16
    OUT_CHANNELS = 4
    NUMBER_LAYERS = 3
    ALPHA = 3
    # kwargs = {'aggregation': 'linear', 'graph_classification': False,
    #           'hidden_units': 16, 'alpha': 3, 'dropout': 0.5}
    # TODO(synk): aggregation == 'concat' (ConcatLinearTransformationLayer) path not implemented.
    # TODO(synk): graph_classification=True (global_mean_pool over data.batch) not exercised.

    N_NODES = 16
    key = jax.random.PRNGKey(0)
    key, kx = jax.random.split(key)

    # Node features (data.x) and a small bidirectional ring graph (data.edge_index).
    x = jax.random.normal(kx, (N_NODES, IN_CHANNELS), jnp.float32)
    src = jnp.arange(N_NODES, dtype=jnp.int32)
    dst = (src + 1) % N_NODES
    edge_index = jnp.concatenate(
        [jnp.stack([src, dst]), jnp.stack([dst, src])], axis=1)     # (2, 32)

    sobolev = build_sobolev_matrices(edge_index, N_NODES, ALPHA)    # (alpha, N, N)
    params = init_ssobgnn_params(key, IN_CHANNELS, HIDDEN_UNITS,
                                 OUT_CHANNELS, NUMBER_LAYERS, ALPHA)

    out = ssobgnn_forward(x, sobolev, params, alpha=ALPHA)
    out = jax.block_until_ready(out)

    assert out.shape == (N_NODES, OUT_CHANNELS)
    # rows of log_softmax must sum (in prob space) to ~1
    assert jnp.allclose(jnp.sum(jnp.exp(out), axis=-1), 1.0, atol=1e-4)
    # cross-check against a pure-JAX f32 reference (loose tol: bf16 matmul operands)
    ref = ssobgnn_reference(x, sobolev, params, alpha=ALPHA)
    assert jnp.allclose(out, ref, atol=5e-2, rtol=5e-2)
    print("KERNEL_OK")
</pallas_src>

<mosaic_0001>
module attributes {stable_mosaic.version = 11 : i64} {
  func.func @kernel(%arg0: i32, %arg1: i32, %arg2: memref<128x8xf32, #tpu.memory_space<vmem>>, %arg3: memref<1x128x128xbf16, #tpu.memory_space<vmem>>, %arg4: memref<1x8x16xbf16, #tpu.memory_space<vmem>>, %arg5: memref<1x1x16xf32, #tpu.memory_space<vmem>>, %arg6: memref<3xf32, #tpu.memory_space<smem>>, %arg7: memref<128x16xf32, #tpu.memory_space<vmem>>) attributes {dimension_semantics = [#tpu.dimension_semantics<parallel>, #tpu.dimension_semantics<arbitrary>], iteration_bounds = array<i64: 1, 3>, scalar_prefetch = 0 : i64, scratch_operands = 0 : i64, tpu.core_type = #tpu.core_type<tc>, window_params = [{pipeline_mode = #tpu.pipeline_mode<synchronous>, transform_indices = @transform_0, window_bounds = array<i64: 128, 8>}, {transform_indices = @transform_1, window_bounds = array<i64: 1, 128, 128>}, {transform_indices = @transform_2, window_bounds = array<i64: 1, 8, 16>}, {transform_indices = @transform_3, window_bounds = array<i64: 1, 1, 16>}, {transform_indices = @transform_4, window_bounds = array<i64: 3>}, {transform_indices = @transform_5, window_bounds = array<i64: 128, 16>}]} {
    %c0 = arith.constant 0 : index
    %c0_0 = arith.constant 0 : index
    %c0_1 = arith.constant 0 : index
    %0 = vector.load %arg3[%c0, %c0_0, %c0_1] : memref<1x128x128xbf16, #tpu.memory_space<vmem>>, vector<1x128x128xbf16>
    %1 = vector.shape_cast %0 : vector<1x128x128xbf16> to vector<128x128xbf16>
    %c0_2 = arith.constant 0 : index
    %c0_3 = arith.constant 0 : index
    %c0_4 = arith.constant 0 : index
    %2 = vector.load %arg4[%c0_2, %c0_3, %c0_4] : memref<1x8x16xbf16, #tpu.memory_space<vmem>>, vector<1x8x16xbf16>
    %3 = vector.shape_cast %2 : vector<1x8x16xbf16> to vector<8x16xbf16>
    %c0_5 = arith.constant 0 : index
    %c0_6 = arith.constant 0 : index
    %4 = vector.load %arg2[%c0_5, %c0_6] : memref<128x8xf32, #tpu.memory_space<vmem>>, vector<128x8xf32>
    %5 = arith.truncf %4 : vector<128x8xf32> to vector<128x8xbf16>
    %cst = arith.constant dense<0.000000e+00> : vector<128x8xf32>
    %6 = tpu.matmul %1, %5, %cst {dimension_numbers = #tpu.dot_dimension_numbers<[1], [0], [0], [1], [0, 0, 1, 1], [], []>} : vector<128x128xbf16>, vector<128x8xbf16>, vector<128x8xf32> -> vector<128x8xf32>
    %7 = arith.truncf %6 : vector<128x8xf32> to vector<128x8xbf16>
    %cst_7 = arith.constant dense<0.000000e+00> : vector<128x16xf32>
    %8 = tpu.matmul %7, %3, %cst_7 {dimension_numbers = #tpu.dot_dimension_numbers<[1], [0], [0], [1], [0, 0, 1, 1], [], []>} : vector<128x8xbf16>, vector<8x16xbf16>, vector<128x16xf32> -> vector<128x16xf32>
    %c0_8 = arith.constant 0 : index
    %c0_9 = arith.constant 0 : index
    %c0_10 = arith.constant 0 : index
    %9 = vector.load %arg5[%c0_8, %c0_9, %c0_10] : memref<1x1x16xf32, #tpu.memory_space<vmem>>, vector<1x1x16xf32>
    %10 = vector.shape_cast %9 : vector<1x1x16xf32> to vector<1x16xf32>
    %11 = vector.broadcast %10 : vector<1x16xf32> to vector<128x16xf32>
    %12 = arith.addf %8, %11 : vector<128x16xf32>
    %13 = arith.index_cast %arg1 : i32 to index
    %14 = memref.load %arg6[%13] : memref<3xf32, #tpu.memory_space<smem>>
    %cst_11 = arith.constant 0.000000e+00 : f32
    %15 = vector.broadcast %cst_11 : f32 to vector<128x16xf32>
    %16 = arith.maximumf %12, %15 : vector<128x16xf32>
    %17 = vector.broadcast %14 : f32 to vector<128x16xf32>
    %18 = arith.mulf %17, %16 : vector<128x16xf32>
    %c0_i32 = arith.constant 0 : i32
    %19 = arith.cmpi eq, %arg1, %c0_i32 : i32
    %20 = arith.extui %19 : i1 to i32
    %c0_i32_12 = arith.constant 0 : i32
    %21 = arith.cmpi ne, %20, %c0_i32_12 : i32
    scf.if %21 {
      %c0_15 = arith.constant 0 : index
      %c0_16 = arith.constant 0 : index
      %25 = vector.load %arg7[%c0_15, %c0_16] : memref<128x16xf32, #tpu.memory_space<vmem>>, vector<128x16xf32>
      tpu.vector_store %arg7[%c0_15, %c0_16], %18 {strides = array<i32>} : memref<128x16xf32, #tpu.memory_space<vmem>>, vector<128x16xf32>,
    } else {
    }
    %c0_i32_13 = arith.constant 0 : i32
    %22 = arith.cmpi sgt, %arg1, %c0_i32_13 : i32
    %23 = arith.extui %22 : i1 to i32
    %c0_i32_14 = arith.constant 0 : i32
    %24 = arith.cmpi ne, %23, %c0_i32_14 : i32
    scf.if %24 {
      %c0_15 = arith.constant 0 : index
      %c0_16 = arith.constant 0 : index
      %25 = vector.load %arg7[%c0_15, %c0_16] : memref<128x16xf32, #tpu.memory_space<vmem>>, vector<128x16xf32>
      %26 = arith.addf %25, %18 : vector<128x16xf32>
      %c0_17 = arith.constant 0 : index
      %c0_18 = arith.constant 0 : index
      %27 = vector.load %arg7[%c0_17, %c0_18] : memref<128x16xf32, #tpu.memory_space<vmem>>, vector<128x16xf32>
      tpu.vector_store %arg7[%c0_17, %c0_18], %26 {strides = array<i32>} : memref<128x16xf32, #tpu.memory_space<vmem>>, vector<128x16xf32>,
    } else {
    }
    return
  }
  func.func @transform_0(%arg0: i32, %arg1: i32) -> (i32, i32) {
    %c0_i32 = arith.constant 0 : i32
    %c0_i32_0 = arith.constant 0 : i32
    %c0_i32_1 = arith.constant 0 : i32
    return %c0_i32, %c0_i32_0 : i32, i32
  }
  func.func @transform_1(%arg0: i32, %arg1: i32) -> (i32, i32, i32) {
    %c0_i32 = arith.constant 0 : i32
    %c0_i32_0 = arith.constant 0 : i32
    return %arg1, %arg0, %c0_i32 : i32, i32, i32
  }
  func.func @transform_2(%arg0: i32, %arg1: i32) -> (i32, i32, i32) {
    %c0_i32 = arith.constant 0 : i32
    %c0_i32_0 = arith.constant 0 : i32
    %c0_i32_1 = arith.constant 0 : i32
    return %arg1, %c0_i32, %c0_i32_0 : i32, i32, i32
  }
  func.func @transform_3(%arg0: i32, %arg1: i32) -> (i32, i32, i32) {
    %c0_i32 = arith.constant 0 : i32
    %c0_i32_0 = arith.constant 0 : i32
    %c0_i32_1 = arith.constant 0 : i32
    return %arg1, %c0_i32, %c0_i32_0 : i32, i32, i32
  }
  func.func @transform_4(%arg0: i32, %arg1: i32) -> i32 {
    %c0_i32 = arith.constant 0 : i32
    %c0_i32_0 = arith.constant 0 : i32
    return %c0_i32 : i32
  }
  func.func @transform_5(%arg0: i32, %arg1: i32) -> (i32, i32) {
    %c0_i32 = arith.constant 0 : i32
    %c0_i32_0 = arith.constant 0 : i32
    return %arg0, %c0_i32 : i32, i32
  }
}

</mosaic_0001>

<bundles_post_ra>
// kernel: tpu_custom_call.1
= control target key start
LH: loop header
LB: loop body
LE: loop exit
PB: predicated region body
PF: predicated region fallthrough
CT: control target
= control target key end

     0   :  { %10 = vsyncpa [#allocation3], 0  ;;  %s1474_s0 = inlined_call_operand.vmem [shape: f32[128,8], index: 0, kind: input, shape index: {}]   ;;  %s1475_s1 = inlined_call_operand.hbm [shape: bf16[3,128,128], index: 1, kind: input, shape index: {}]   ;;  %s1476_s2 = inlined_call_operand.vmem [shape: bf16[3,8,16], index: 2, kind: input, shape index: {}]   ;;  %s1477_s3 = inlined_call_operand.vmem [shape: f32[3,1,16], index: 3, kind: input, shape index: {}]   ;;  %s1478_s4 = inlined_call_operand.vmem [shape: f32[3], index: 4, kind: input, shape index: {}]   ;;  %s1479_s5 = inlined_call_operand.vmem [shape: f32[128,16], index: 5, kind: output, shape index: {}]  }
   0x1   :  { %12 = vsyncpa [#allocation3 + $0x1], 0 }
   0x2   :  { %13 = vsyncpa [#allocation4], 0  ;;  %s1034_s18 = smov 0   ;;  %s1036_s19 = smov 0  }
   0x3   :  { %s1038_s20 = smov 0   ;;  %s1040_s21 = smov 0  }
   0x4   :  { %s1042_s22 = smov 0   ;;  %s1044_s23 = smov 0  }
   0x5 LB: > { %s756_s24 = sadd.s32 4294967295, %s999_s23   ;;  %s61_s25 = sadd.s32 1, %s987_s20  ;;  %s999_s23 = sphi %s1044_s23, %s19_s23   ;;  %s995_s22 = sphi %s1042_s22, %s1488_s22   ;;  %s991_s21 = sphi %s1040_s21, %s1487_s21   ;;  %s987_s20 = sphi %s1038_s20, %s1486_s20   ;;  %s983_s19 = sphi %s1036_s19, %s1485_s19   ;;  %s979_s18 = sphi %s1034_s18, %s1484_s18  }
   0x6   : > { %p68_p0 = scmp.ne.s32.totalorder %s987_s20, %s983_s19  ;;  %p69_p1 = scmp.eq.s32.totalorder %s999_s23, 0 }
   0x7   : > { %p74_p2 = scmp.ne.s32.totalorder %s983_s19, %s979_s18  ;;  %p1068_p3 = scmp.eq.s32.totalorder %s756_s24, 0 }
   0x8   : > { %p70_p4 = por %p69_p1, %p68_p0  ;;  %p757_p5 = scmp.ge.s32.totalorder %s999_s23, 1 }
   0x9   : > { %p1075_p6 = por %p1068_p3, %p74_p2  ;;  %p184_p7 = scmp.lt.s32.totalorder %s999_s23, 4 }
   0xa   : > { %s199_s30 = sshll.u32 %s1478_s4, 4  ;;  %p846_p10 = scmp.lt.s32.totalorder %s999_s23, 3  ;;  %s200_s30 = int_to_ptr.vmem [resolvable:$true] %s199_s30 }
   0xb   : > { %p1083_p8 = pnand %p757_p5, %p184_p7  ;;  %s210_s7 = sand.u32 1, %s987_s20  }
   0xc   : > { %p1093_p12 = pnand %p846_p10, %p70_p4  ;;  %s1001_s9 = smov [#allocation5]  }
   0xd   : > { %p837_p9 = pneg %p1083_p8  ;;  %s28_s10 = sadd.s32 1, %s995_s22 }
   0xe   : > { %s760_s11 = sshll.u32 %s210_s7, 6  ;;  %p29_p13 = scmp.ge.s32.totalorder %s28_s10, 3 }
   0xf   : > { %p838_p11 = pnand %p837_p9, %p1068_p3  ;;  %s813_s12 = sshll.u32 %s995_s22, 6 }
  0x10   : > { %s214_s13 = scalar_lea.vmem [#allocation2], %s760_s11  ;;  %s1490_s10 = smov (%p29_p13, %s28_s10), 0 }
  0x11   : > { %840 = dma.vmem_to_smem (!%p838_p11), %s200_s30, 16, %s1001_s9, [#allocation4]  }
  0x12   : > { %s224_s14 = sshll.u32 %s214_s13, 4  ;;  %s221_s17 = scalar_lea.hbm %s1475_s1, %s813_s12  ;;  %s225_s14 = int_to_ptr.vmem [resolvable:$true] %s224_s14 }
  0x13   : > { %s56_s18 = ssub.s32 %s995_s22, %s1490_s10  ;;  %s222_s24 = sshll.u32 %s221_s17, 4  ;;  %s223_s24 = int_to_ptr.hbm [resolvable:$true] %s222_s24 }
  0x14   : > { %p59_p0 = scmp.eq.s32.totalorder %s56_s18, 0  ;;  %s211_s29 = scalar_lea.sflag [#allocation3], %s210_s7 }
  0x15   : > { %s1002_s30 = smov 64   ;;  %s1003_s9 = smov 4  }
  0x16   : > { %s1109_s28 = scalar_select %p59_p0, %s987_s20, %s61_s25  }
  0x17   : > { %844 = dma.hbm_to_vmem [thread:$0]  (!%p1093_p12), %s223_s24, 1024, %s225_s14, %s211_s29, %s1002_s30, %s1002_s30, %s1003_s9  }
  0x18   : > { %249 = sbr.rel (%p1083_p8) target bundleno = 450 (0x1c2), region = 40  ;;  %s251_s11 = sand.u32 (!%p1083_p8), 1, %s983_s19  }
  0x19   : > { %s764_s12 = sshll.u32 (!%p1083_p8), %s251_s11, 6  ;;  %s252_s13 = scalar_lea.sflag (!%p1083_p8), [#allocation3], %s251_s11 }
  0x1a   : > { %s1116_s15 = scalar_lea.vmem (!%p1083_p8), [#allocation2], %s764_s12 }
  0x1d   : > { %970 = dma.done.wait (%p1075_p6), %s252_s13, 1024  }
  0x1e   : > { %972 = vsyncadd (%p1075_p6), %s252_s13, 4294966272 }
  0x1f   : > { %974 = dma.done.wait (%p1068_p3), [#allocation4], 16  }
  0x20   : > { %976 = vsyncadd (%p1068_p3), [#allocation4], 4294967280 }
  0x21   : > { %266 = sfence }
  0x22   : > { %v342_v0 = vld [vmem:[%s1474_s0 + $0x70] sm:$0xff]  ;;  %v343_v1 = vld [vmem:[%s1474_s0 + $0x78] sm:$0xff]  ;;  %v340_v2 = vld [vmem:[%s1474_s0 + $0x60] sm:$0xff]  ;;  %p297_p1 = scmp.lt.s32.totalorder %s991_s21, 2  ;;  %vm486_vm0 = vcmask 1043456   ;;  %vm461_vm1 = vcmask 64512  }
  0x23   : > { %v351_v3 = vpack.c.bf16 %v343_v1, %v342_v0  ;;  %v341_v4 = vld [vmem:[%s1474_s0 + $0x68] sm:$0xff]  ;;  %v338_v6 = vld [vmem:[%s1474_s0 + $0x50] sm:$0xff]  ;;  %v339_v7 = vld [vmem:[%s1474_s0 + $0x58] sm:$0xff]  ;;  %p807_p2 = scmp.ne.s32.totalorder %s991_s21, 0 }
  0x24   : > { %v350_v5 = vpack.c.bf16 %v341_v4, %v340_v2  ;;  %v349_v8 = vpack.c.bf16 %v339_v7, %v338_v6  ;;  %v336_v9 = vld [vmem:[%s1474_s0 + $0x40] sm:$0xff]  ;;  %v337_v10 = vld [vmem:[%s1474_s0 + $0x48] sm:$0xff]  ;;  %v334_v12 = vld [vmem:[%s1474_s0 + $0x30] sm:$0xff]  ;;  %s1178_s12 = scalar_select %p297_p1, %s991_s21, 2 }
  0x25   : > { %400 = vmatpush.bf16.msra.mxu0 %v351_v3  ;;  %822 = vmatpush.bf16.msra.mxu2 %v351_v3  ;;  %v348_v11 = vpack.c.bf16 %v337_v10, %v336_v9  ;;  %v335_v13 = vld [vmem:[%s1474_s0 + $0x38] sm:$0xff]  ;;  %v332_v15 = vld [vmem:[%s1474_s0 + $0x20] sm:$0xff]  ;;  %v333_v16 = vld [vmem:[%s1474_s0 + $0x28] sm:$0xff] }
  0x26   : > { %v347_v14 = vpack.c.bf16 %v335_v13, %v334_v12  ;;  %v346_v17 = vpack.c.bf16 %v333_v16, %v332_v15  ;;  %v330_v18 = vld [vmem:[%s1474_s0 + $0x10] sm:$0xff]  ;;  %v331_v19 = vld [vmem:[%s1474_s0 + $0x18] sm:$0xff]  ;;  %v328_v21 = vld [vmem:[%s1474_s0] sm:$0xff]  ;;  %s303_s6 = scalar_lea.vmem %s1477_s3, %s1178_s12  ;;  %s766_s7 = sshll.u32 %s1178_s12, 2 }
  0x27   : > { %v345_v20 = vpack.c.bf16 %v331_v19, %v330_v18  ;;  %v329_v22 = vld [vmem:[%s1474_s0 + $0x8] sm:$0xff]  ;;  %v814_v24 = vld [vmem:[%s1116_s15] sm:$0xff]  ;;  %v816_v28 = vld [vmem:[%s1116_s15 + $0x10] sm:$0xff]  ;;  %s300_s16 = scalar_lea.vmem %s1476_s2, %s766_s7 }
  0x28   : > { %v344_v23 = vpack.c.bf16 %v329_v22, %v328_v21  ;;  %v818_v25 = vld [vmem:[%s1116_s15 + $0x20] sm:$0xff]  ;;  %v815_v26 = vld [vmem:[%s1116_s15 + $0x8] sm:$0xff]  ;;  %v820_v29 = vld [vmem:[%s1116_s15 + $0x30] sm:$0xff] }
  0x29   : > { %401 = vmatpush.bf16.msra.mxu0 %v350_v5  ;;  %823 = vmatpush.bf16.msra.mxu2 %v350_v5  ;;  %v819_v27 = vld [vmem:[%s1116_s15 + $0x28] sm:$0xff]  ;;  %v817_v30 = vld [vmem:[%s1116_s15 + $0x18] sm:$0xff]  ;;  %v327_v32 = vld [vmem:[%s300_s16] sm:$0xf] }
  0x2a   : > { %v821_v31 = vld [vmem:[%s1116_s15 + $0x38] sm:$0xff]  ;;  %v488_v33 = vsel %vm486_vm0, %v327_v32, 0  ;;  %s539_s15 = sld [smem:[#allocation5 + %s991_s21]]  ;;  %v1208_v58 = vld [vmem:[%s303_s6] ss:$0 sm:$0xff] }
  0x2b   : > { %497 = vmatpush.bf16.msra.mxu1 %v488_v33  ;;  %830 = vmatpush.bf16.msra.mxu3 %v488_v33 }
  0x2d   : > { %402 = vmatpush.bf16.msra.mxu0 %v349_v8  ;;  %824 = vmatpush.bf16.msra.mxu2 %v349_v8 }
  0x30   : > { %v556_v61 = vstv %s539_s15 }
  0x31   : > { %403 = vmatpush.bf16.msra.mxu0 %v348_v11  ;;  %825 = vmatpush.bf16.msra.mxu2 %v348_v11 }
  0x35   : > { %404 = vmatpush.bf16.msra.mxu0 %v347_v14  ;;  %826 = vmatpush.bf16.msra.mxu2 %v347_v14 }
  0x39   : > { %405 = vmatpush.bf16.msra.mxu0 %v346_v17  ;;  %827 = vmatpush.bf16.msra.mxu2 %v346_v17 }
  0x3d   : > { %406 = vmatpush.bf16.msra.mxu0 %v345_v20  ;;  %828 = vmatpush.bf16.msra.mxu2 %v345_v20 }
  0x41   : > { %407 = vmatpush.bf16.msra.mxu0 %v344_v23  ;;  %829 = vmatpush.bf16.msra.mxu2 %v344_v23 }
  0x44   : > { %408 = vmatmul.bf16.vlgmr.msra.gmra.mxu0 %v814_v24  ;;  %428 = vmatmul.bf16.vlgmr.msra.gmra.mxu2 %v818_v25 }
  0x54   : > { %413 = vmatmul.bf16.gmra.mxu0 %v815_v26  ;;  %433 = vmatmul.bf16.gmra.mxu2 %v819_v27 }
  0x64   : > { %418 = vmatmul.bf16.gmra.mxu0 %v816_v28  ;;  %438 = vmatmul.bf16.gmra.mxu2 %v820_v29 }
  0x74   : > { %423 = vmatmul.bf16.gmra.mxu0 %v817_v30  ;;  %443 = vmatmul.bf16.gmra.mxu2 %v821_v31 }
  0xc1   : > { %v409_v34 = vpop.f32.mrf.mxu0 }
  0xc7   : > { %v429_v35 = vpop.f32.mrf.mxu2 }
  0xc9   : > { %v411_v36 = vpop.f32.mrf.mxu0 }
  0xca   : > { %v449_v37 = vpack.c.bf16 %v411_v36, %v409_v34 }
  0xcc   : > { %799 = vmatmul.msk.bf16.vlgmr.msra.gmra.mxu1 %vm461_vm1, %v449_v37 }
  0xcf   : > { %v431_v38 = vpop.f32.mrf.mxu2 }
  0xd0   : > { %v453_v57 = vpack.c.bf16 %v431_v38, %v429_v35 }
  0xd1   : > { %v414_v39 = vpop.f32.mrf.mxu0 }
  0xd7   : > { %v434_v40 = vpop.f32.mrf.mxu2 }
  0xd9   : > { %v416_v41 = vpop.f32.mrf.mxu0 }
  0xda   : > { %v450_v42 = vpack.c.bf16 %v416_v41, %v414_v39 }
  0xdc   : > { %800 = vmatmul.msk.bf16.gmra.mxu1 %vm461_vm1, %v450_v42 }
  0xdf   : > { %v436_v43 = vpop.f32.mrf.mxu2 }
  0xe0   : > { %v454_v44 = vpack.c.bf16 %v436_v43, %v434_v40 }
  0xe1   : > { %v419_v45 = vpop.f32.mrf.mxu0 }
  0xe2   : > { %804 = vmatmul.msk.bf16.vlgmr.msra.gmra.mxu3 %vm461_vm1, %v454_v44 }
  0xe7   : > { %v439_v46 = vpop.f32.mrf.mxu2 }
  0xe9   : > { %v421_v47 = vpop.f32.mrf.mxu0 }
  0xea   : > { %v451_v48 = vpack.c.bf16 %v421_v47, %v419_v45 }
  0xec   : > { %801 = vmatmul.msk.bf16.gmra.mxu1 %vm461_vm1, %v451_v48 }
  0xef   : > { %v441_v49 = vpop.f32.mrf.mxu2 }
  0xf0   : > { %v455_v50 = vpack.c.bf16 %v441_v49, %v439_v46 }
  0xf1   : > { %v424_v51 = vpop.f32.mrf.mxu0 }
  0xf2   : > { %805 = vmatmul.msk.bf16.gmra.mxu3 %vm461_vm1, %v455_v50 }
  0xf7   : > { %v444_v52 = vpop.f32.mrf.mxu2 }
  0xf9   : > { %v426_v53 = vpop.f32.mrf.mxu0 }
  0xfa   : > { %v452_v54 = vpack.c.bf16 %v426_v53, %v424_v51 }
  0xfc   : > { %802 = vmatmul.msk.bf16.gmra.mxu1 %vm461_vm1, %v452_v54 }
  0xff   : > { %v446_v55 = vpop.f32.mrf.mxu2 }
 0x100   : > { %v456_v56 = vpack.c.bf16 %v446_v55, %v444_v52 }
 0x102   : > { %806 = vmatmul.msk.bf16.gmra.mxu3 %vm461_vm1, %v456_v56 }
 0x10c   : > { %803 = vmatmul.msk.bf16.gmra.mxu1 %vm461_vm1, %v453_v57 }
 0x149   : > { %v499_v59 = vpop.f32.mrf.mxu1 }
 0x14a   : > { %v500_v60 = vadd.f32 %v1208_v58, %v499_v59 }
 0x14c   : > { %v540_v62 = vmax.f32 %v500_v60, 0.0 }
 0x14e   : > { %v1211_v63 = vmul.f32 %v556_v61, %v540_v62 }
 0x151   : > { %v501_v0 = vpop.f32.mrf.mxu1 }
 0x152   : > { %v502_v1 = vadd.f32 %v1208_v58, %v501_v0 }
 0x154   : > { %v541_v2 = vmax.f32 %v502_v1, 0.0 }
 0x156   : > { %v1214_v3 = vmul.f32 %v556_v61, %v541_v2 }
 0x159   : > { %v504_v4 = vpop.f32.mrf.mxu1 }
 0x15a   : > { %v505_v5 = vadd.f32 %v1208_v58, %v504_v4 }
 0x15c   : > { %v542_v6 = vmax.f32 %v505_v5, 0.0 }
 0x15e   : > { %v1217_v7 = vmul.f32 %v556_v61, %v542_v6 }
 0x161   : > { %v506_v8 = vpop.f32.mrf.mxu1 }
 0x162   : > { %v507_v9 = vadd.f32 %v1208_v58, %v506_v8 }
 0x164   : > { %v543_v10 = vmax.f32 %v507_v9, 0.0 }
 0x165   : > { %v524_v11 = vpop.f32.mrf.mxu3 }
 0x166   : > { %v1220_v12 = vmul.f32 %v556_v61, %v543_v10  ;;  %v525_v13 = vadd.f32 %v1208_v58, %v524_v11 }
 0x168   : > { %v550_v14 = vmax.f32 %v525_v13, 0.0 }
 0x169   : > { %v509_v15 = vpop.f32.mrf.mxu1 }
 0x16a   : > { %v1223_v16 = vmul.f32 %v556_v61, %v550_v14  ;;  %v510_v17 = vadd.f32 %v1208_v58, %v509_v15 }
 0x16c   : > { %v544_v18 = vmax.f32 %v510_v17, 0.0 }
 0x16d   : > { %v526_v19 = vpop.f32.mrf.mxu3 }
 0x16e   : > { %v1226_v20 = vmul.f32 %v556_v61, %v544_v18  ;;  %v527_v21 = vadd.f32 %v1208_v58, %v526_v19 }
 0x170   : > { %v551_v22 = vmax.f32 %v527_v21, 0.0 }
 0x171   : > { %v511_v23 = vpop.f32.mrf.mxu1 }
 0x172   : > { %v1229_v24 = vmul.f32 %v556_v61, %v551_v22  ;;  %v512_v25 = vadd.f32 %v1208_v58, %v511_v23 }
 0x174   : > { %v545_v26 = vmax.f32 %v512_v25, 0.0 }
 0x175   : > { %v529_v27 = vpop.f32.mrf.mxu3 }
 0x176   : > { %v1232_v28 = vmul.f32 %v556_v61, %v545_v26  ;;  %v530_v29 = vadd.f32 %v1208_v58, %v529_v27 }
 0x178   : > { %v552_v30 = vmax.f32 %v530_v29, 0.0 }
 0x179   : > { %v514_v31 = vpop.f32.mrf.mxu1 }
 0x17a   : > { %v1235_v32 = vmul.f32 %v556_v61, %v552_v30  ;;  %v515_v33 = vadd.f32 %v1208_v58, %v514_v31 }
 0x17c   : > { %v546_v34 = vmax.f32 %v515_v33, 0.0 }
 0x17d   : > { %v531_v35 = vpop.f32.mrf.mxu3 }
 0x17e   : > { %v1238_v36 = vmul.f32 %v556_v61, %v546_v34  ;;  %v532_v37 = vadd.f32 %v1208_v58, %v531_v35 }
 0x180   : > { %v553_v38 = vmax.f32 %v532_v37, 0.0 }
 0x181   : > { %v516_v39 = vpop.f32.mrf.mxu1 }
 0x182   : > { %v1241_v40 = vmul.f32 %v556_v61, %v553_v38  ;;  %v517_v41 = vadd.f32 %v1208_v58, %v516_v39 }
 0x184   : > { %v547_v42 = vmax.f32 %v517_v41, 0.0 }
 0x185   : > { %v534_v43 = vpop.f32.mrf.mxu3 }
 0x186   : > { %v564_v44 = vmul.f32 %v556_v61, %v547_v42  ;;  %v535_v45 = vadd.f32 %v1208_v58, %v534_v43 }
 0x188   : > { %v554_v46 = vmax.f32 %v535_v45, 0.0 }
 0x189   : > { %v519_v47 = vpop.f32.mrf.mxu1 }
 0x18a   : > { %v1245_v48 = vmul.f32 %v556_v61, %v554_v46  ;;  %v520_v49 = vadd.f32 %v1208_v58, %v519_v47 }
 0x18c   : > { %v548_v50 = vmax.f32 %v520_v49, 0.0 }
 0x18d   : > { %v536_v51 = vpop.f32.mrf.mxu3 }
 0x18e   : > { %v565_v52 = vmul.f32 %v556_v61, %v548_v50  ;;  %v537_v53 = vadd.f32 %v1208_v58, %v536_v51 }
 0x190   : > { %v555_v54 = vmax.f32 %v537_v53, 0.0 }
 0x191   : > { %v521_v55 = vpop.f32.mrf.mxu1 }
 0x192   : > { %v1249_v56 = vmul.f32 %v556_v61, %v555_v54  ;;  %v522_v57 = vadd.f32 %v1208_v58, %v521_v55  ;;  %576 = sbr.rel (%p807_p2) target bundleno = 424 (0x1a8), region = 52 }
 0x194   : > { %v549_v59 = vmax.f32 %v522_v57, 0.0 }
 0x196   : > { %v566_v60 = vmul.f32 %v556_v61, %v549_v59 }
 0x197   : > { %vm577_vm2 = vcmask 130048  }
 0x198   : > { %578 = vst.msk [vmem:[%s1479_s5] sm:$0xff] %vm577_vm2, %v1211_v63 }
 0x199   : > { %579 = vst.msk [vmem:[%s1479_s5 + $0x8] sm:$0xff] %vm577_vm2, %v1214_v3 }
 0x19a   : > { %580 = vst.msk [vmem:[%s1479_s5 + $0x10] sm:$0xff] %vm577_vm2, %v1217_v7 }
 0x19b   : > { %581 = vst.msk [vmem:[%s1479_s5 + $0x18] sm:$0xff] %vm577_vm2, %v1220_v12 }
 0x19c   : > { %582 = vst.msk [vmem:[%s1479_s5 + $0x20] sm:$0xff] %vm577_vm2, %v1226_v20 }
 0x19d   : > { %583 = vst.msk [vmem:[%s1479_s5 + $0x28] sm:$0xff] %vm577_vm2, %v1232_v28 }
 0x19e   : > { %584 = vst.msk [vmem:[%s1479_s5 + $0x30] sm:$0xff] %vm577_vm2, %v1238_v36 }
 0x19f   : > { %585 = vst.msk [vmem:[%s1479_s5 + $0x38] sm:$0xff] %vm577_vm2, %v564_v44 }
 0x1a0   : > { %586 = vst.msk [vmem:[%s1479_s5 + $0x40] sm:$0xff] %vm577_vm2, %v565_v52 }
 0x1a1   : > { %587 = vst.msk [vmem:[%s1479_s5 + $0x48] sm:$0xff] %vm577_vm2, %v566_v60 }
 0x1a2   : > { %588 = vst.msk [vmem:[%s1479_s5 + $0x50] sm:$0xff] %vm577_vm2, %v1223_v16 }
 0x1a3   : > { %589 = vst.msk [vmem:[%s1479_s5 + $0x58] sm:$0xff] %vm577_vm2, %v1229_v24 }
 0x1a4   : > { %590 = vst.msk [vmem:[%s1479_s5 + $0x60] sm:$0xff] %vm577_vm2, %v1235_v32 }
 0x1a5   : > { %591 = vst.msk [vmem:[%s1479_s5 + $0x68] sm:$0xff] %vm577_vm2, %v1241_v40 }
 0x1a6   : > { %592 = vst.msk [vmem:[%s1479_s5 + $0x70] sm:$0xff] %vm577_vm2, %v1245_v48 }
 0x1a7   : > { %593 = vst.msk [vmem:[%s1479_s5 + $0x78] sm:$0xff] %vm577_vm2, %v1249_v56 }
 0x1a8 PF: > { %p808_p3 = scmp.le.s32.totalorder %s991_s21, 0 }
 0x1aa   : > { %597 = sbr.rel (%p808_p3) target bundleno = 450 (0x1c2), region = 56 }
 0x1af   : > { %v598_v58 = vld [vmem:[%s1479_s5] sm:$0xff]  ;;  %vm630_vm3 = vcmask 130048   ;;  %v599_v61 = vld [vmem:[%s1479_s5 + $0x8] sm:$0xff]  ;;  %v600_v62 = vld [vmem:[%s1479_s5 + $0x10] sm:$0xff] }
 0x1b0   : > { %v614_v0 = vadd.f32 %v598_v58, %v1211_v63  ;;  %v615_v1 = vadd.f32 %v599_v61, %v1214_v3  ;;  %v616_v2 = vadd.f32 %v600_v62, %v1217_v7  ;;  %v601_v4 = vld [vmem:[%s1479_s5 + $0x18] sm:$0xff]  ;;  %v602_v5 = vld [vmem:[%s1479_s5 + $0x20] sm:$0xff]  ;;  %v603_v6 = vld [vmem:[%s1479_s5 + $0x28] sm:$0xff] }
 0x1b1   : > { %v617_v8 = vadd.f32 %v601_v4, %v1220_v12  ;;  %v604_v63 = vld [vmem:[%s1479_s5 + $0x30] sm:$0xff]  ;;  %v618_v3 = vadd.f32 %v602_v5, %v1226_v20  ;;  %v605_v7 = vld [vmem:[%s1479_s5 + $0x38] sm:$0xff]  ;;  %v619_v9 = vadd.f32 %v603_v6, %v1232_v28  ;;  %v606_v10 = vld [vmem:[%s1479_s5 + $0x40] sm:$0xff] }
 0x1b2   : > { %631 = vst.msk [vmem:[%s1479_s5] sm:$0xff] %vm630_vm3, %v614_v0  ;;  %v620_v11 = vadd.f32 %v604_v63, %v1238_v36  ;;  %v607_v12 = vld [vmem:[%s1479_s5 + $0x48] sm:$0xff]  ;;  %v621_v13 = vadd.f32 %v605_v7, %v564_v44  ;;  %v608_v14 = vld [vmem:[%s1479_s5 + $0x50] sm:$0xff]  ;;  %v622_v15 = vadd.f32 %v606_v10, %v565_v52  ;;  %v609_v17 = vld [vmem:[%s1479_s5 + $0x58] sm:$0xff] }
 0x1b3   : > { %632 = vst.msk [vmem:[%s1479_s5 + $0x8] sm:$0xff] %vm630_vm3, %v615_v1  ;;  %v623_v18 = vadd.f32 %v607_v12, %v566_v60  ;;  %v610_v19 = vld [vmem:[%s1479_s5 + $0x60] sm:$0xff]  ;;  %v624_v20 = vadd.f32 %v608_v14, %v1223_v16  ;;  %v611_v21 = vld [vmem:[%s1479_s5 + $0x68] sm:$0xff]  ;;  %v625_v22 = vadd.f32 %v609_v17, %v1229_v24  ;;  %v612_v23 = vld [vmem:[%s1479_s5 + $0x70] sm:$0xff] }
 0x1b4   : > { %633 = vst.msk [vmem:[%s1479_s5 + $0x10] sm:$0xff] %vm630_vm3, %v616_v2  ;;  %v626_v16 = vadd.f32 %v610_v19, %v1235_v32  ;;  %v613_v25 = vld [vmem:[%s1479_s5 + $0x78] sm:$0xff]  ;;  %v627_v24 = vadd.f32 %v611_v21, %v1241_v40  ;;  %v628_v26 = vadd.f32 %v612_v23, %v1245_v48 }
 0x1b5   : > { %634 = vst.msk [vmem:[%s1479_s5 + $0x18] sm:$0xff] %vm630_vm3, %v617_v8  ;;  %v629_v27 = vadd.f32 %v613_v25, %v1249_v56 }
 0x1b6   : > { %635 = vst.msk [vmem:[%s1479_s5 + $0x20] sm:$0xff] %vm630_vm3, %v618_v3 }
 0x1b7   : > { %636 = vst.msk [vmem:[%s1479_s5 + $0x28] sm:$0xff] %vm630_vm3, %v619_v9 }
 0x1b8   : > { %637 = vst.msk [vmem:[%s1479_s5 + $0x30] sm:$0xff] %vm630_vm3, %v620_v11 }
 0x1b9   : > { %638 = vst.msk [vmem:[%s1479_s5 + $0x38] sm:$0xff] %vm630_vm3, %v621_v13 }
 0x1ba   : > { %639 = vst.msk [vmem:[%s1479_s5 + $0x40] sm:$0xff] %vm630_vm3, %v622_v15 }
 0x1bb   : > { %640 = vst.msk [vmem:[%s1479_s5 + $0x48] sm:$0xff] %vm630_vm3, %v623_v18 }
 0x1bc   : > { %641 = vst.msk [vmem:[%s1479_s5 + $0x50] sm:$0xff] %vm630_vm3, %v624_v20 }
 0x1bd   : > { %642 = vst.msk [vmem:[%s1479_s5 + $0x58] sm:$0xff] %vm630_vm3, %v625_v22 }
 0x1be   : > { %643 = vst.msk [vmem:[%s1479_s5 + $0x60] sm:$0xff] %vm630_vm3, %v626_v16 }
 0x1bf   : > { %644 = vst.msk [vmem:[%s1479_s5 + $0x68] sm:$0xff] %vm630_vm3, %v627_v24 }
 0x1c0   : > { %645 = vst.msk [vmem:[%s1479_s5 + $0x70] sm:$0xff] %vm630_vm3, %v628_v26 }
 0x1c1   : > { %646 = vst.msk [vmem:[%s1479_s5 + $0x78] sm:$0xff] %vm630_vm3, %v629_v27 }
 0x1c2 PF: > { %s19_s23 = sadd.s32 1, %s999_s23   ;;  %s1484_s18 = smov %s983_s19 }
 0x1c3   : > { %p16_p4 = scmp.ge.s32.totalorder %s19_s23, 5   ;;  %s1485_s19 = smov %s987_s20 }
 0x1c4   : > { %s1486_s20 = smov %s1109_s28  ;;  %s1487_s21 = smov %s995_s22 }
 0x1c5   : > { %s1488_s22 = smov %s1490_s10  ;;  %18 = sbr.rel (!%p16_p4) target bundleno = 5 (0x5), region = 99 }
 0x1ca   :  { %669 = vsyncpa [#allocation3], 1 }
 0x1cb   :  { %671 = vsyncpa [#allocation3 + $0x1], 1 }
 0x1cc   :  { %672 = vsyncpa [#allocation4], 1 }
 0x1cd   :  { %674 = vsyncpa [#allocation4 + $0x1], 1 }

</bundles_post_ra>
